<compile_context>
chip_gen: v7x
topology: tpu7x:2x2x1
jax: 0.10.0
libtpu: 0.0.40
codegen_flags: <defaults>
</compile_context>

<pallas_src>
import jax
import jax.numpy as jnp
from jax.experimental import pallas as pl
from jax.experimental.pallas import tpu as pltpu


def weighted_sum_kernel(alpha_ref, x_ref, y_ref, o_ref):
    # alpha is a learned scalar parameter held in SMEM.
    a = alpha_ref[0, 0]
    x = x_ref[...].astype(jnp.float32)
    y = y_ref[...].astype(jnp.float32)
    o_ref[...] = (a * x + (1.0 - a) * y).astype(o_ref.dtype)


def _big_vmem_chip():
    """True on 128 MiB-VMEM generations (v4/v5e/v5p/v6e); False (conservative,
    v7x-safe) when the chip has 64 MiB per TensorCore or detection fails."""
    try:
        cap = int(getattr(pltpu.get_tpu_info(), "vmem_capacity_bytes", 0))
        if cap:
            return cap >= 100 * 1024 * 1024
    except Exception:
        pass
    try:
        kind = jax.devices()[0].device_kind.lower()
        return any(tag in kind for tag in ("v4", "v5", "v6"))
    except Exception:
        return False


def _round_up(v, m):
    return -(-v // m) * m


def _weighted_sum_2d(alpha2, x2, y2, row_tile, vmem_limit):
    rows, lane = x2.shape
    grid = (pl.cdiv(rows, row_tile),)
    return pl.pallas_call(
        weighted_sum_kernel,
        out_shape=jax.ShapeDtypeStruct((rows, lane), x2.dtype),
        grid_spec=pltpu.PrefetchScalarGridSpec(
            num_scalar_prefetch=0,
            grid=grid,
            in_specs=[
                pl.BlockSpec((1, 1), lambda i: (0, 0),
                             memory_space=pltpu.SMEM),             # alpha scalar
                pl.BlockSpec((row_tile, lane), lambda i: (i, 0)),  # x tile
                pl.BlockSpec((row_tile, lane), lambda i: (i, 0)),  # y tile
            ],
            out_specs=pl.BlockSpec((row_tile, lane), lambda i: (i, 0)),
        ),
        compiler_params=pltpu.CompilerParams(
            dimension_semantics=("parallel",),   # shards blocks across v7x's 2 TCs
            vmem_limit_bytes=vmem_limit,
        ),
    )(alpha2, x2, y2)


def weighted_sum(alpha, x, y):
    """alpha: scalar; x/y: same-shape arrays. Returns alpha*x + (1-alpha)*y."""
    assert x.shape == y.shape and x.dtype == y.dtype
    orig_shape = x.shape
    total = x.size
    itemsize = jnp.dtype(x.dtype).itemsize
    alpha_f32 = jnp.asarray(alpha, dtype=jnp.float32)
    alpha2 = alpha_f32.reshape(1, 1)

    def _xla_mix(xt, yt):
        return (alpha_f32 * xt.astype(jnp.float32)
                + (1.0 - alpha_f32) * yt.astype(jnp.float32)).astype(x.dtype)

    # ---- generation-aware / dtype-aware tile byte budget --------------------
    if _big_vmem_chip():
        tile_bytes = 8 * 1024 * 1024     # 3 arrays x 2 bufs x 8 MiB = 48 MiB
        vmem_limit = 64 * 1024 * 1024
    else:
        tile_bytes = 4 * 1024 * 1024     # 3 arrays x 2 bufs x 4 MiB = 24 MiB
        vmem_limit = 40 * 1024 * 1024
    min_sub = max(8, 8 * max(1, 4 // itemsize))   # 8 (f32) / 16 (bf16) / 32 (i8)

    # ---- lane-dense 2-D view: widest 128-multiple lane that divides total ---
    lane = None
    for cand in (1024, 512, 256, 128):
        if total % cand == 0:
            lane = cand
            break

    if lane is not None:
        main, tail = total, 0
    else:
        # Truly ragged size (not a multiple of 128): kernel on the aligned
        # prefix, plain XLA on the tiny (<1024-element) tail.
        lane = 1024
        main = (total // lane) * lane
        tail = total - main

    if main == 0:
        # Sub-1024-element array: not worth a kernel launch.
        return _xla_mix(x, y)

    if tail:
        flat_x = x.reshape(-1)
        flat_y = y.reshape(-1)
        x2 = flat_x[:main].reshape(-1, lane)
        y2 = flat_y[:main].reshape(-1, lane)
    else:
        x2 = x.reshape(-1, lane)   # zero-pad-free, contiguous view
        y2 = y.reshape(-1, lane)
    rows = main // lane

    # ---- row tile: biggest tile within the byte budget. Partial last blocks
    # are masked by Pallas, so no padding is ever needed. Mid-size arrays are
    # split into >= 2 blocks so both v7x TensorCores get work. ----------------
    row_tile = max(min_sub, (tile_bytes // (lane * itemsize)) // min_sub * min_sub)
    if rows <= row_tile:
        if rows >= 2 * min_sub:
            row_tile = _round_up(-(-rows // 2), min_sub)   # >= 2 grid blocks
        else:
            row_tile = rows   # full extent -> exempt from the 8-row rule

    out2 = _weighted_sum_2d(alpha2, x2, y2, row_tile, vmem_limit)

    if tail:
        out_tail = _xla_mix(flat_x[main:], flat_y[main:])
        # TODO(synk): the ragged path still pays one output-sized concatenate
        # copy; donation/dynamic_update_slice could remove it but is not worth
        # the complexity for a <1024-element tail.
        return jnp.concatenate([out2.reshape(-1), out_tail]).reshape(orig_shape)
    return out2.reshape(orig_shape)


if __name__ == "__main__":
    key = jax.random.PRNGKey(0)
    kx, ky = jax.random.split(key)

    # Shapes consistent with an NCHW activation pair.
    B, C, H, W = 2, 4, 16, 16
    x = jax.random.normal(kx, (B, C, H, W), dtype=jnp.float32)
    y = jax.random.normal(ky, (B, C, H, W), dtype=jnp.float32)

    # Deterministic parameter init, mirroring nn.Parameter(torch.tensor(0.5)).
    alpha = jnp.float32(0.5)

    ws = jax.jit(weighted_sum)

    out = jax.block_until_ready(ws(alpha, x, y))
    ref = alpha * x + (1.0 - alpha) * y
    assert out.shape == x.shape and out.dtype == x.dtype
    assert jnp.allclose(out, ref, atol=1e-6, rtol=1e-6)

    # Ragged size (1155 elements, not a multiple of 128): prefix kernel + XLA tail.
    kx2, ky2 = jax.random.split(ky)
    x2 = jax.random.normal(kx2, (3, 5, 7, 11), dtype=jnp.float32)
    y2 = jax.random.normal(ky2, (3, 5, 7, 11), dtype=jnp.float32)
    a2 = jnp.float32(0.3)
    out2 = jax.block_until_ready(ws(a2, x2, y2))
    ref2 = a2 * x2 + (1.0 - a2) * y2
    assert out2.shape == x2.shape and out2.dtype == x2.dtype
    assert jnp.allclose(out2, ref2, atol=1e-6, rtol=1e-6)

    print("KERNEL_OK")
</pallas_src>

<mosaic_0001>
module attributes {stable_mosaic.version = 11 : i64} {
  func.func @weighted_sum_kernel(%arg0: i32, %arg1: memref<1x1xf32, #tpu.memory_space<smem>>, %arg2: memref<2x1024xf32, #tpu.memory_space<vmem>>, %arg3: memref<2x1024xf32, #tpu.memory_space<vmem>>, %arg4: memref<2x1024xf32, #tpu.memory_space<vmem>>) attributes {dimension_semantics = [#tpu.dimension_semantics<parallel>], iteration_bounds = array<i64: 1>, scalar_prefetch = 0 : i64, scratch_operands = 0 : i64, tpu.core_type = #tpu.core_type<tc>, window_params = [{transform_indices = @transform_0, window_bounds = array<i64: 1, 1>}, {transform_indices = @transform_1, window_bounds = array<i64: 2, 1024>}, {transform_indices = @transform_2, window_bounds = array<i64: 2, 1024>}, {transform_indices = @transform_3, window_bounds = array<i64: 2, 1024>}]} {
    %c0 = arith.constant 0 : index
    %c0_0 = arith.constant 0 : index
    %0 = memref.load %arg1[%c0, %c0_0] : memref<1x1xf32, #tpu.memory_space<smem>>
    %c0_1 = arith.constant 0 : index
    %c0_2 = arith.constant 0 : index
    %1 = vector.load %arg2[%c0_1, %c0_2] : memref<2x1024xf32, #tpu.memory_space<vmem>>, vector<2x1024xf32>
    %c0_3 = arith.constant 0 : index
    %c0_4 = arith.constant 0 : index
    %2 = vector.load %arg3[%c0_3, %c0_4] : memref<2x1024xf32, #tpu.memory_space<vmem>>, vector<2x1024xf32>
    %3 = vector.broadcast %0 : f32 to vector<2x1024xf32>
    %4 = arith.mulf %3, %1 : vector<2x1024xf32>
    %cst = arith.constant 1.000000e+00 : f32
    %5 = arith.subf %cst, %0 : f32
    %6 = vector.broadcast %5 : f32 to vector<2x1024xf32>
    %7 = arith.mulf %6, %2 : vector<2x1024xf32>
    %8 = arith.addf %4, %7 : vector<2x1024xf32>
    %c0_5 = arith.constant 0 : index
    %c0_6 = arith.constant 0 : index
    %9 = vector.load %arg4[%c0_5, %c0_6] : memref<2x1024xf32, #tpu.memory_space<vmem>>, vector<2x1024xf32>
    tpu.vector_store %arg4[%c0_5, %c0_6], %8 {strides = array<i32>} : memref<2x1024xf32, #tpu.memory_space<vmem>>, vector<2x1024xf32>,
    return
  }
  func.func @transform_0(%arg0: i32) -> (i32, i32) {
    %c0_i32 = arith.constant 0 : i32
    %c0_i32_0 = arith.constant 0 : i32
    %c0_i32_1 = arith.constant 0 : i32
    return %c0_i32, %c0_i32_0 : i32, i32
  }
  func.func @transform_1(%arg0: i32) -> (i32, i32) {
    %c0_i32 = arith.constant 0 : i32
    %c0_i32_0 = arith.constant 0 : i32
    return %arg0, %c0_i32 : i32, i32
  }
  func.func @transform_2(%arg0: i32) -> (i32, i32) {
    %c0_i32 = arith.constant 0 : i32
    %c0_i32_0 = arith.constant 0 : i32
    return %arg0, %c0_i32 : i32, i32
  }
  func.func @transform_3(%arg0: i32) -> (i32, i32) {
    %c0_i32 = arith.constant 0 : i32
    %c0_i32_0 = arith.constant 0 : i32
    return %arg0, %c0_i32 : i32, i32
  }
}

</mosaic_0001>

<bundles_post_ra>
// kernel: weighted_sum.1
= control target key start
LH: loop header
LB: loop body
LE: loop exit
PB: predicated region body
PF: predicated region fallthrough
CT: control target
= control target key end

     0   :  { %s79_s0 = inlined_call_operand.<no memory space> [shape: f32[1,1], index: 0, kind: input, shape index: {}]   ;;  %s80_s1 = inlined_call_operand.vmem [shape: f32[2,1024], index: 1, kind: input, shape index: {}]   ;;  %s81_s2 = inlined_call_operand.vmem [shape: f32[2,1024], index: 2, kind: input, shape index: {}]   ;;  %s82_s3 = inlined_call_operand.vmem [shape: f32[2,1024], index: 3, kind: output, shape index: {}]  }
   0x1   :  { %v16_v0 = vld [vmem:[%s80_s1] sm:$0xff]  ;;  %v20_v2 = vstv %s79_s0  ;;  %s23_s20 = ssub.f32 1.0, %s79_s0  ;;  %v17_v3 = vld [vmem:[%s80_s1 + $0x8] sm:$0xff] }
   0x2   :  { %v18_v1 = vld [vmem:[%s81_s2] sm:$0xff]  ;;  %v21_v4 = vmul.f32 %v20_v2, %v16_v0  ;;  %v19_v5 = vld [vmem:[%s81_s2 + $0x8] sm:$0xff]  ;;  %v22_v6 = vmul.f32 %v20_v2, %v17_v3 }
   0x3   :  { %v24_v7 = vstv %s23_s20 }
   0x4   :  { %v25_v8 = vmul.f32 %v24_v7, %v18_v1  ;;  %v26_v9 = vmul.f32 %v24_v7, %v19_v5 }
   0x6   :  { %v27_v10 = vadd.f32 %v25_v8, %v21_v4  ;;  %v28_v11 = vadd.f32 %v26_v9, %v22_v6 }
   0x8   :  { %29 = vst [vmem:[%s82_s3] sm:$0xff] %v27_v10  ;;  %30 = vst [vmem:[%s82_s3 + $0x8] sm:$0xff] %v28_v11 }

</bundles_post_ra>
